<compile_context>
chip_gen: v5e
topology: v5e:2x2
jax: 0.10.0
libtpu: 0.0.40
codegen_flags: <defaults>
</compile_context>

<pallas_src>
import functools

import jax
import jax.numpy as jnp
from jax.experimental import pallas as pl
from jax.experimental.pallas import tpu as pltpu


# ----------------------------- Pallas kernels ------------------------------

def _conv_row_kernel(x_ref, w_ref, b_ref, o_ref, acc_ref, *,
                     kh, kw, stride, w_out, c_in):
    """One grid step = one (batch, output row, C_out tile, kernel row i).

    x_ref: (1, 1, Wp, C_in)        bf16  padded input row  ho*stride + i
    w_ref: (1, kw*C_in, tn)        bf16  weight slab for kernel row i
    b_ref: (1, tn)                 f32   bias
    o_ref: (1, 1, W_out, tn)       f32   output row (written at i == kh-1)
    acc_ref: (W_out, tn)           f32   VMEM accumulator across i
    """
    i = pl.program_id(3)

    @pl.when(i == 0)
    def _init():
        acc_ref[...] = jnp.zeros_like(acc_ref)

    partial = None
    for j in range(kw):
        if stride == 1:
            xj = x_ref[0, 0, pl.ds(j, w_out), :]                     # (W_out, C_in) bf16
        else:
            xj = x_ref[0, 0, pl.ds(j, w_out, stride=stride), :]      # strided cols
        wj = w_ref[0, pl.ds(j * c_in, c_in), :]                      # (C_in, tn) bf16
        d = jnp.dot(xj, wj, preferred_element_type=jnp.float32)      # MXU, f32 acc
        partial = d if partial is None else partial + d
    acc_ref[...] += partial

    @pl.when(i == kh - 1)
    def _finalize():
        r = acc_ref[...] + b_ref[...]                                # f32 epilogue
        r = jnp.where(r >= 0, r, 0.1 * r)                            # LeakyReLU(0.1)
        o_ref[0, 0] = r.astype(o_ref.dtype)


def _maxpool_row_kernel(x_ref, o_ref, *, kernel, stride, w_out):
    """One grid step = one (batch, pooled output row, pool row tap i).

    x_ref: (1, 1, W, C)  input row  ho*stride + i
    o_ref: (1, 1, W_out, C)  resident across i; running max.
    """
    i = pl.program_id(2)

    if kernel == stride:
        # Non-overlapping pool (the common YOLO case): contiguous read + reshape.
        xw = x_ref[0, 0, pl.ds(0, kernel * w_out), :]                # (kernel*W_out, C)
        c = xw.shape[-1]
        row = jnp.max(xw.reshape(w_out, kernel, c), axis=1)          # (W_out, C)
    else:
        row = None
        for j in range(kernel):
            if stride == 1:
                v = x_ref[0, 0, pl.ds(j, w_out), :]
            else:
                v = x_ref[0, 0, pl.ds(j, w_out, stride=stride), :]
            row = v if row is None else jnp.maximum(row, v)

    @pl.when(i == 0)
    def _first():
        o_ref[0, 0] = row

    @pl.when(i > 0)
    def _rest():
        o_ref[0, 0] = jnp.maximum(o_ref[0, 0], row)


# ------------------------------- wrappers -----------------------------------

def _pick_cout_tile(c_out):
    if c_out % 256 == 0:
        return 256
    if c_out % 128 == 0:
        return 128
    return c_out  # small widths: full dim (satisfies the full-extent rule)


def conv2d_leakyrelu(x_nhwc, w_r, b2, *, kh, kw, stride, padding):
    """x_nhwc: (N, H, W, C_in) f32; w_r: (kh, kw*C_in, C_out) bf16; b2: (1, C_out) f32."""
    n, h, w_in, c_in = x_nhwc.shape
    c_out = w_r.shape[-1]
    assert w_r.shape == (kh, kw * c_in, c_out)

    # Halo pad + bf16 cast in one pass (the only HBM copy of the activation).
    x_pad = jnp.pad(
        x_nhwc, ((0, 0), (padding, padding), (padding, padding), (0, 0))
    ).astype(jnp.bfloat16)
    hp, wp = h + 2 * padding, w_in + 2 * padding
    h_out = (hp - kh) // stride + 1
    w_out = (wp - kw) // stride + 1

    tn = _pick_cout_tile(c_out)
    grid = (n, h_out, c_out // tn, kh)   # reduction axis (kh) last

    kernel = functools.partial(
        _conv_row_kernel, kh=kh, kw=kw, stride=stride, w_out=w_out, c_in=c_in)

    out = pl.pallas_call(
        kernel,
        out_shape=jax.ShapeDtypeStruct((n, h_out, w_out, c_out), jnp.float32),
        grid_spec=pltpu.PrefetchScalarGridSpec(
            num_scalar_prefetch=0,
            grid=grid,
            in_specs=[
                # one padded input row per step, row index = ho*stride + i
                pl.BlockSpec((1, 1, wp, c_in),
                             lambda nb, ho, co, i: (nb, ho * stride + i, 0, 0)),
                # weight slab for kernel row i, C_out tile co
                pl.BlockSpec((1, kw * c_in, tn),
                             lambda nb, ho, co, i: (i, 0, co)),
                # bias tile
                pl.BlockSpec((1, tn),
                             lambda nb, ho, co, i: (0, co)),
            ],
            out_specs=pl.BlockSpec((1, 1, w_out, tn),
                                   lambda nb, ho, co, i: (nb, ho, 0, co)),
            scratch_shapes=[pltpu.VMEM((w_out, tn), jnp.float32)],
        ),
        compiler_params=pltpu.CompilerParams(
            dimension_semantics=("parallel", "parallel", "parallel", "arbitrary")),
    )(x_pad, w_r, b2)
    return out


def maxpool2d(x_nhwc, kernel, stride):
    """PyTorch MaxPool2d semantics: no padding, floor mode. Reads NHWC rows directly."""
    n, h, w, c = x_nhwc.shape
    h_out = (h - kernel) // stride + 1
    w_out = (w - kernel) // stride + 1

    kfn = functools.partial(_maxpool_row_kernel,
                            kernel=kernel, stride=stride, w_out=w_out)

    out = pl.pallas_call(
        kfn,
        out_shape=jax.ShapeDtypeStruct((n, h_out, w_out, c), x_nhwc.dtype),
        grid_spec=pltpu.PrefetchScalarGridSpec(
            num_scalar_prefetch=0,
            grid=(n, h_out, kernel),
            in_specs=[pl.BlockSpec((1, 1, w, c),
                                   lambda nb, ho, i: (nb, ho * stride + i, 0, 0))],
            out_specs=pl.BlockSpec((1, 1, w_out, c),
                                   lambda nb, ho, i: (nb, ho, 0, 0)),
        ),
        compiler_params=pltpu.CompilerParams(
            dimension_semantics=("parallel", "parallel", "arbitrary")),
    )(x_nhwc)
    return out


class ConvolutionBlock:
    """Mirrors the PyTorch ConvolutionBlock: Conv2d+LeakyReLU(0.1) stack, optional MaxPool2d."""

    def __init__(self, in_c, channels, kernels, strides, pool, key):
        self.kernels = list(kernels)
        self.strides = list(strides)
        self.pool = pool
        self.params = []       # PyTorch-layout f32 params (used by the reference)
        self.layer_args = []   # precomputed kernel-ready layouts (bf16 weights)
        prev = in_c
        for c, k, s in zip(channels, kernels, strides):
            key, wk, bk = jax.random.split(key, 3)
            fan_in = prev * k * k
            bound = 1.0 / (fan_in ** 0.5)  # PyTorch default Conv2d init range
            w = jax.random.uniform(wk, (c, prev, k, k), jnp.float32, -bound, bound)
            b = jax.random.uniform(bk, (c,), jnp.float32, -bound, bound)
            self.params.append((w, b))
            # (C_out, C_in, kh, kw) -> (kh, kw*C_in, C_out), cast once to bf16.
            w_r = jnp.transpose(w, (2, 3, 1, 0)).reshape(k, k * prev, c).astype(jnp.bfloat16)
            b2 = b.reshape(1, c).astype(jnp.float32)
            self.layer_args.append((w_r, b2, k, s, k // 2))
            prev = c

    def __call__(self, x_nchw):
        x = jnp.transpose(x_nchw, (0, 2, 3, 1))  # NCHW -> NHWC
        for w_r, b2, k, s, p in self.layer_args:
            x = conv2d_leakyrelu(x, w_r, b2, kh=k, kw=k, stride=s, padding=p)
        if self.pool:
            # TODO(synk): pooling could be fused into the preceding conv epilogue
            # once multiple output rows per step are blocked; kept standalone here.
            x = maxpool2d(x, self.pool[0], self.pool[1])
        return jnp.transpose(x, (0, 3, 1, 2))  # NHWC -> NCHW


# --------------------------- pure-JAX reference ------------------------------

def _ref_forward(x_nchw, params, kernels, strides, pool):
    out = x_nchw
    for (w, b), k, s in zip(params, kernels, strides):
        out = jax.lax.conv_general_dilated(
            out, w, window_strides=(s, s),
            padding=[(k // 2, k // 2), (k // 2, k // 2)],
            dimension_numbers=("NCHW", "OIHW", "NCHW"))
        out = out + b.reshape(1, -1, 1, 1)
        out = jnp.where(out >= 0, out, 0.1 * out)
    if pool:
        out = jax.lax.reduce_window(
            out, -jnp.inf, jax.lax.max,
            window_dimensions=(1, 1, pool[0], pool[0]),
            window_strides=(1, 1, pool[1], pool[1]),
            padding="VALID")
    return out


if __name__ == "__main__":
    key = jax.random.PRNGKey(0)
    key, xk, pk = jax.random.split(key, 3)

    block = ConvolutionBlock(
        in_c=4, channels=[8, 16], kernels=[3, 3], strides=[1, 1],
        pool=(2, 2), key=pk)

    x = jax.random.normal(xk, (2, 4, 16, 16), jnp.float32)  # NCHW like PyTorch

    y = block(x)
    jax.block_until_ready(y)

    y_ref = _ref_forward(x, block.params, block.kernels, block.strides, block.pool)
    assert y.shape == y_ref.shape, (y.shape, y_ref.shape)
    # bf16 matmul inputs with f32 accumulation: loosen tolerance vs the f32 reference.
    max_err = float(jnp.max(jnp.abs(y - y_ref)))
    assert jnp.allclose(y, y_ref, atol=5e-2, rtol=5e-2), f"mismatch, max abs err {max_err}"

    print("KERNEL_OK")
</pallas_src>

<mosaic_0001>
module attributes {stable_mosaic.version = 11 : i64} {
  func.func @_conv_row_kernel(%arg0: i32, %arg1: i32, %arg2: i32, %arg3: i32, %arg4: memref<1x1x18x4xbf16, #tpu.memory_space<vmem>>, %arg5: memref<1x12x8xbf16, #tpu.memory_space<vmem>>, %arg6: memref<1x8xf32, #tpu.memory_space<vmem>>, %arg7: memref<1x1x16x8xf32, #tpu.memory_space<vmem>>, %arg8: memref<16x8xf32, #tpu.memory_space<vmem>>) attributes {dimension_semantics = [#tpu.dimension_semantics<parallel>, #tpu.dimension_semantics<parallel>, #tpu.dimension_semantics<parallel>, #tpu.dimension_semantics<arbitrary>], iteration_bounds = array<i64: 2, 16, 1, 3>, scalar_prefetch = 0 : i64, scratch_operands = 1 : i64, tpu.core_type = #tpu.core_type<tc>, window_params = [{transform_indices = @transform_0, window_bounds = array<i64: 1, 1, 18, 4>}, {transform_indices = @transform_1, window_bounds = array<i64: 1, 12, 8>}, {transform_indices = @transform_2, window_bounds = array<i64: 1, 8>}, {transform_indices = @transform_3, window_bounds = array<i64: 1, 1, 16, 8>}]} {
    %c0_i32 = arith.constant 0 : i32
    %0 = arith.cmpi eq, %arg3, %c0_i32 : i32
    %1 = arith.extui %0 : i1 to i32
    %c0_i32_0 = arith.constant 0 : i32
    %2 = arith.cmpi ne, %1, %c0_i32_0 : i32
    scf.if %2 {
      %cst_24 = arith.constant 0.000000e+00 : f32
      %26 = vector.broadcast %cst_24 : f32 to vector<16x8xf32>
      %c0_25 = arith.constant 0 : index
      %c0_26 = arith.constant 0 : index
      %27 = vector.load %arg8[%c0_25, %c0_26] : memref<16x8xf32, #tpu.memory_space<vmem>>, vector<16x8xf32>
      tpu.vector_store %arg8[%c0_25, %c0_26], %26 {strides = array<i32>} : memref<16x8xf32, #tpu.memory_space<vmem>>, vector<16x8xf32>,
    } else {
    }
    %c0 = arith.constant 0 : index
    %c0_1 = arith.constant 0 : index
    %c0_2 = arith.constant 0 : index
    %c0_3 = arith.constant 0 : index
    %3 = vector.load %arg4[%c0, %c0_1, %c0_2, %c0_3] : memref<1x1x18x4xbf16, #tpu.memory_space<vmem>>, vector<1x1x16x4xbf16>
    %4 = vector.shape_cast %3 : vector<1x1x16x4xbf16> to vector<16x4xbf16>
    %c0_4 = arith.constant 0 : index
    %c0_5 = arith.constant 0 : index
    %c0_6 = arith.constant 0 : index
    %5 = vector.load %arg5[%c0_4, %c0_5, %c0_6] : memref<1x12x8xbf16, #tpu.memory_space<vmem>>, vector<1x4x8xbf16>
    %6 = vector.shape_cast %5 : vector<1x4x8xbf16> to vector<4x8xbf16>
    %cst = arith.constant dense<0.000000e+00> : vector<16x8xf32>
    %7 = tpu.matmul %4, %6, %cst {dimension_numbers = #tpu.dot_dimension_numbers<[1], [0], [0], [1], [0, 0, 1, 1], [], []>} : vector<16x4xbf16>, vector<4x8xbf16>, vector<16x8xf32> -> vector<16x8xf32>
    %c0_7 = arith.constant 0 : index
    %c0_8 = arith.constant 0 : index
    %c1 = arith.constant 1 : index
    %c0_9 = arith.constant 0 : index
    %8 = vector.load %arg4[%c0_7, %c0_8, %c1, %c0_9] : memref<1x1x18x4xbf16, #tpu.memory_space<vmem>>, vector<1x1x16x4xbf16>
    %9 = vector.shape_cast %8 : vector<1x1x16x4xbf16> to vector<16x4xbf16>
    %c0_10 = arith.constant 0 : index
    %c4 = arith.constant 4 : index
    %c0_11 = arith.constant 0 : index
    %10 = vector.load %arg5[%c0_10, %c4, %c0_11] : memref<1x12x8xbf16, #tpu.memory_space<vmem>>, vector<1x4x8xbf16>
    %11 = vector.shape_cast %10 : vector<1x4x8xbf16> to vector<4x8xbf16>
    %cst_12 = arith.constant dense<0.000000e+00> : vector<16x8xf32>
    %12 = tpu.matmul %9, %11, %cst_12 {dimension_numbers = #tpu.dot_dimension_numbers<[1], [0], [0], [1], [0, 0, 1, 1], [], []>} : vector<16x4xbf16>, vector<4x8xbf16>, vector<16x8xf32> -> vector<16x8xf32>
    %13 = arith.addf %7, %12 : vector<16x8xf32>
    %c0_13 = arith.constant 0 : index
    %c0_14 = arith.constant 0 : index
    %c2 = arith.constant 2 : index
    %c0_15 = arith.constant 0 : index
    %14 = vector.load %arg4[%c0_13, %c0_14, %c2, %c0_15] : memref<1x1x18x4xbf16, #tpu.memory_space<vmem>>, vector<1x1x16x4xbf16>
    %15 = vector.shape_cast %14 : vector<1x1x16x4xbf16> to vector<16x4xbf16>
    %c0_16 = arith.constant 0 : index
    %c8 = arith.constant 8 : index
    %c0_17 = arith.constant 0 : index
    %16 = vector.load %arg5[%c0_16, %c8, %c0_17] : memref<1x12x8xbf16, #tpu.memory_space<vmem>>, vector<1x4x8xbf16>
    %17 = vector.shape_cast %16 : vector<1x4x8xbf16> to vector<4x8xbf16>
    %cst_18 = arith.constant dense<0.000000e+00> : vector<16x8xf32>
    %18 = tpu.matmul %15, %17, %cst_18 {dimension_numbers = #tpu.dot_dimension_numbers<[1], [0], [0], [1], [0, 0, 1, 1], [], []>} : vector<16x4xbf16>, vector<4x8xbf16>, vector<16x8xf32> -> vector<16x8xf32>
    %19 = arith.addf %13, %18 : vector<16x8xf32>
    %c0_19 = arith.constant 0 : index
    %c0_20 = arith.constant 0 : index
    %20 = vector.load %arg8[%c0_19, %c0_20] : memref<16x8xf32, #tpu.memory_space<vmem>>, vector<16x8xf32>
    %21 = arith.addf %20, %19 : vector<16x8xf32>
    %c0_21 = arith.constant 0 : index
    %c0_22 = arith.constant 0 : index
    %22 = vector.load %arg8[%c0_21, %c0_22] : memref<16x8xf32, #tpu.memory_space<vmem>>, vector<16x8xf32>
    tpu.vector_store %arg8[%c0_21, %c0_22], %21 {strides = array<i32>} : memref<16x8xf32, #tpu.memory_space<vmem>>, vector<16x8xf32>,
    %c2_i32 = arith.constant 2 : i32
    %23 = arith.cmpi eq, %arg3, %c2_i32 : i32
    %24 = arith.extui %23 : i1 to i32
    %c0_i32_23 = arith.constant 0 : i32
    %25 = arith.cmpi ne, %24, %c0_i32_23 : i32
    scf.if %25 {
      %c0_24 = arith.constant 0 : index
      %c0_25 = arith.constant 0 : index
      %26 = vector.load %arg8[%c0_24, %c0_25] : memref<16x8xf32, #tpu.memory_space<vmem>>, vector<16x8xf32>
      %c0_26 = arith.constant 0 : index
      %c0_27 = arith.constant 0 : index
      %27 = vector.load %arg6[%c0_26, %c0_27] : memref<1x8xf32, #tpu.memory_space<vmem>>, vector<1x8xf32>
      %28 = vector.broadcast %27 : vector<1x8xf32> to vector<16x8xf32>
      %29 = arith.addf %26, %28 : vector<16x8xf32>
      %cst_28 = arith.constant 0.000000e+00 : f32
      %30 = vector.broadcast %cst_28 : f32 to vector<16x8xf32>
      %31 = arith.cmpf oge, %29, %30 : vector<16x8xf32>
      %cst_29 = arith.constant 1.000000e-01 : f32
      %32 = vector.broadcast %cst_29 : f32 to vector<16x8xf32>
      %33 = arith.mulf %32, %29 : vector<16x8xf32>
      %34 = arith.select %31, %29, %33 : vector<16x8xi1>, vector<16x8xf32>
      %c0_30 = arith.constant 0 : index
      %c0_31 = arith.constant 0 : index
      %c0_32 = arith.constant 0 : index
      %c0_33 = arith.constant 0 : index
      %35 = vector.load %arg7[%c0_30, %c0_31, %c0_32, %c0_33] : memref<1x1x16x8xf32, #tpu.memory_space<vmem>>, vector<1x1x16x8xf32>
      %36 = vector.shape_cast %35 : vector<1x1x16x8xf32> to vector<16x8xf32>
      %37 = vector.shape_cast %34 : vector<16x8xf32> to vector<1x1x16x8xf32>
      tpu.vector_store %arg7[%c0_30, %c0_31, %c0_32, %c0_33], %37 {strides = array<i32>} : memref<1x1x16x8xf32, #tpu.memory_space<vmem>>, vector<1x1x16x8xf32>,
    } else {
    }
    return
  }
  func.func @transform_0(%arg0: i32, %arg1: i32, %arg2: i32, %arg3: i32) -> (i32, i32, i32, i32) {
    %c1_i32 = arith.constant 1 : i32
    %0 = arith.muli %arg1, %c1_i32 : i32
    %1 = arith.addi %0, %arg3 : i32
    %c0_i32 = arith.constant 0 : i32
    %c0_i32_0 = arith.constant 0 : i32
    %c0_i32_1 = arith.constant 0 : i32
    return %arg0, %1, %c0_i32, %c0_i32_0 : i32, i32, i32, i32
  }
  func.func @transform_1(%arg0: i32, %arg1: i32, %arg2: i32, %arg3: i32) -> (i32, i32, i32) {
    %c0_i32 = arith.constant 0 : i32
    %c0_i32_0 = arith.constant 0 : i32
    return %arg3, %c0_i32, %arg2 : i32, i32, i32
  }
  func.func @transform_2(%arg0: i32, %arg1: i32, %arg2: i32, %arg3: i32) -> (i32, i32) {
    %c0_i32 = arith.constant 0 : i32
    %c0_i32_0 = arith.constant 0 : i32
    return %c0_i32, %arg2 : i32, i32
  }
  func.func @transform_3(%arg0: i32, %arg1: i32, %arg2: i32, %arg3: i32) -> (i32, i32, i32, i32) {
    %c0_i32 = arith.constant 0 : i32
    %c0_i32_0 = arith.constant 0 : i32
    return %arg0, %arg1, %c0_i32, %arg2 : i32, i32, i32, i32
  }
}

</mosaic_0001>

<bundles_post_ra>
// kernel: tpu_custom_call.1
= control target key start
LH: loop header
LB: loop body
LE: loop exit
PB: predicated region body
PF: predicated region fallthrough
CT: control target
= control target key end

     0   :  { %s727_s12 = smov 0   ;;  %s729_s13 = smov 0   ;;  %s828_s0 = inlined_call_operand.vmem [shape: bf16[2,18,18,4], index: 0, kind: input, shape index: {}]   ;;  %s829_s1 = inlined_call_operand.vmem [shape: bf16[3,12,8], index: 1, kind: input, shape index: {}]   ;;  %s830_s2 = inlined_call_operand.vmem [shape: f32[1,8], index: 2, kind: input, shape index: {}]   ;;  %s831_s3 = inlined_call_operand.vmem [shape: f32[2,16,16,8], index: 3, kind: output, shape index: {}]  }
   0x1   :  { %s731_s14 = smov 0   ;;  %s733_s15 = smov 0  }
   0x2   :  { %s735_s16 = smov 0   ;;  %s737_s17 = smov 0  }
   0x3   :  { %s739_s18 = smov 0  }
   0x4 LB: > { %s28_s19 = sadd.s32 1, %s692_s15  ;;  %s35_s20 = sadd.s32 1, %s696_s16  ;;  %s704_s18 = sphi %s739_s18, %s13_s18   ;;  %s700_s17 = sphi %s737_s17, %s841_s17   ;;  %s696_s16 = sphi %s735_s16, %s840_s16   ;;  %s692_s15 = sphi %s733_s15, %s839_s15   ;;  %s688_s14 = sphi %s731_s14, %s838_s14   ;;  %s684_s13 = sphi %s729_s13, %s837_s13   ;;  %s680_s12 = sphi %s727_s12, %s836_s12  }
   0x5   : > { %p29_p0 = scmp.ge.s32.totalorder %s28_s19, 3  ;;  %p568_p1 = scmp.ge.s32.totalorder %s704_s18, 1 }
   0x6   : > { %p200_p2 = scmp.lt.s32.totalorder %s704_s18, 97  ;;  %s39_s21 = sadd.s32 1, %s700_s17 }
   0x7   : > { %s843_s19 = smov (%p29_p0, %s28_s19), 0  ;;  %s845_s20 = smov (!%p29_p0, %s35_s20), %s696_s16 }
   0x8   : > { %p201_p3 = pnand %p568_p1, %p200_p2  ;;  %p37_p4 = scmp.ge.s32.totalorder %s845_s20, 16 }
   0x9   : > { %s247_s22 = sadd.s32 (!%p201_p3), %s680_s12, %s684_s13  ;;  %p248_p6 = scmp.lt.s32.totalorder (!%p201_p3), %s688_s14, 1 }
   0xa   : > { %s847_s20 = smov (%p37_p4, %s845_s20), 0  ;;  %s849_s21 = smov (!%p37_p4, %s39_s21), %s700_s17 }
   0xb   : > { %832 = sst [smem:[#allocation3_spill]] %s847_s20  ;;  %p41_p5 = scmp.ge.s32.totalorder %s849_s21, 2 }
   0xc   : > { %204 = sbr.rel (%p201_p3) target bundleno = 199 (0xc7), region = 32  ;;  %p250_p7 = scmp.lt.s32.totalorder (!%p201_p3), %s247_s22, 17 }
   0xd   : > { %s851_s21 = smov (%p41_p5, %s849_s21), 0  ;;  %p258_p8 = scmp.lt.s32.totalorder (!%p201_p3), %s680_s12, 2 }
   0xe   : > { %833 = sst [smem:[#allocation4_spill]] %s851_s21  ;;  %p271_p9 = scmp.lt.s32.totalorder (!%p201_p3), %s684_s13, 15 }
   0xf   : > { %p575_p10 = scmp.ne.s32.totalorder (!%p201_p3), %s680_s12, 0 }
  0x11   : > { %s853_s14 = smov (!%p248_p6, %s688_s14), 1  ;;  %s855_s22 = smov (!%p250_p7, %s247_s22), 17 }
  0x12   : > { %s591_s23 = smul.u32 54, %s853_s14  ;;  %s573_s27 = sshll.u32 %s853_s14, 5 }
  0x13   : > { %s590_s24 = smul.u32 3, %s855_s22  ;;  %s857_s13 = smov (!%p271_p9, %s684_s13), 15 }
  0x14   : > { %s259_s25 = scalar_select %p258_p8, %s680_s12, 2 }
  0x15   : > { %s254_s26 = sadd.s32 %s591_s23, %s590_s24  ;;  %s572_s9 = sshll.u32 %s857_s13, 1 }
  0x16   : > { %s569_s28 = sshll.u32 %s254_s26, 2  ;;  %s582_s29 = sshll.u32 %s259_s25, 3 }
  0x17   : > { %s256_s5 = scalar_lea.vmem %s828_s0, %s569_s28  ;;  %s265_s8 = scalar_lea.vmem %s829_s1, %s582_s29 }
  0x18   : > { %s278_s10 = sadd.s32 %s573_s27, %s572_s9  ;;  %285 = sbr.rel (%p575_p10) target bundleno = 32 (0x20), region = 36 }
  0x19   : > { %s574_s11 = sshll.u32 %s278_s10, 3 }
  0x1a   : > { %s788_s20 = scalar_lea.vmem %s831_s3, %s574_s11 }
  0x1d   : > { %vm286_vm0 = vcmask 64512   ;;  %v706_v0 = vmov 0.0  }
  0x1e   : > { %287 = vst.msk [vmem:[#allocation2] sm:$0xff] %vm286_vm0, %v706_v0 }
  0x1f   : > { %288 = vst.msk [vmem:[#allocation2 + $0x8] sm:$0xff] %vm286_vm0, %v706_v0 }
  0x20 PF: > { %v291_v1 = vld [vmem:[%s265_s8] sm:$0x3]  ;;  %vm323_vm1 = vcmask 1041408   ;;  %v361_v5 = vld [vmem:[%s265_s8 + $0x4] sm:$0x3]  ;;  %vm319_vm2 = vcmask 31744  }
  0x21   : > { %v584_v2 = vld [vmem:[%s256_s5] sm:$0xff]   ;;  %v344_v3 = vsel %vm323_vm1, %v291_v1, 0  ;;  %v373_v6 = vsel %vm323_vm1, %v361_v5, 0  ;;  %v292_v10 = vld [vmem:[%s256_s5 + $0x8] sm:$0x1]  ;;  %vm365_vm3 = vcmask 1046528  }
  0x22   : > { %v306_v4 = vshll.u32 %v584_v2, 16  ;;  %353 = vmatpush.bf16.msra.mxu1 %v344_v3  ;;  %v293_v7 = vld [vmem:[%s265_s8] sm:$0xc]  ;;  %v587_v8 = vld [vmem:[%s256_s5] sm:$0xf0]  ;;  %382 = vmatpush.bf16.msra.mxu2 %v373_v6  ;;  %v304_v12 = vshrl.u32 %v584_v2, 16  ;;  %v299_v14 = vunpack.c.l.b16 %v292_v10 }
  0x23   : > { %v316_v9 = vunpack.c.l.b16 %v293_v7  ;;  %v588_v11 = vld [vmem:[%s256_s5] sm:$0xe]  ;;  %vm302_vm4 = vsmask.f32 7424  ;;  %vm395_vm5 = vcmask 64512   ;;  %p579_p11 = scmp.ne.s32.totalorder %s680_s12, 2 }
  0x24   : > { %v308_v13 = vrot.slane %v306_v4, 1  ;;  %v589_v15 = vor.u32 %v588_v11, %v587_v8  ;;  %v301_v17 = vpack.c.b16 %v299_v14, %v299_v14 }
  0x25   : > { %577 = vmatmul.msk.bf16.vlgmr.msra.gmra.mxu1 %vm319_vm2, %v584_v2  ;;  %v317_v16 = vpack.c.b16 %v316_v9, %v316_v9  ;;  %v391_v31 = vld [vmem:[#allocation2] sm:$0xff] }
  0x26   : > { %v366_v18 = vrot.slane %v589_v15, 1  ;;  %v309_v20 = vor.u32 %v308_v13, %v304_v12  ;;  %v367_v21 = vrot.slane %v301_v17, 1  ;;  %v311_v22 = vshll.u32 %v301_v17, 16  ;;  %v392_v38 = vld [vmem:[#allocation2 + $0x8] sm:$0xff] }
  0x27   : > { %v318_v19 = vrot.slane %v317_v16, 2 }
  0x28   : > { %v368_v24 = vsel %vm365_vm3, %v366_v18, %v367_v21  ;;  %v313_v25 = vrot.slane %v311_v22, 1 }
  0x29   : > { %v325_v23 = vsel %vm323_vm1, %v318_v19, 0  ;;  %578 = vmatmul.msk.bf16.vlgmr.msra.gmra.mxu2 %vm319_vm2, %v368_v24 }
  0x2a   : > { %334 = vmatpush.bf16.msra.mxu0 %v325_v23  ;;  %v314_v26 = vsel %vm302_vm4, %v309_v20, %v313_v25 }
  0x2d   : > { %576 = vmatmul.msk.bf16.vlgmr.msra.gmra.mxu0 %vm319_vm2, %v314_v26 }
  0xa2   : > { %v355_v27 = vpop.f32.mrf.mxu1 }
  0xaa   : > { %v336_v28 = vpop.f32.mrf.mxu0  ;;  %v357_v34 = vpop.f32.mrf.mxu1 }
  0xab   : > { %v356_v29 = vadd.f32 %v355_v27, %v336_v28 }
  0xac   : > { %v384_v30 = vpop.f32.mrf.mxu2 }
  0xad   : > { %v389_v32 = vadd.f32 %v384_v30, %v356_v29 }
  0xaf   : > { %v393_v33 = vadd.f32 %v391_v31, %v389_v32 }
  0xb1   : > { %396 = vst.msk [vmem:[#allocation2] sm:$0xff] %vm395_vm5, %v393_v33 }
  0xb2   : > { %v338_v35 = vpop.f32.mrf.mxu0 }
  0xb3   : > { %v358_v36 = vadd.f32 %v357_v34, %v338_v35 }
  0xb4   : > { %v386_v37 = vpop.f32.mrf.mxu2 }
  0xb5   : > { %v390_v39 = vadd.f32 %v386_v37, %v358_v36  ;;  %401 = sbr.rel (%p579_p11) target bundleno = 199 (0xc7), region = 40 }
  0xb7   : > { %v394_v40 = vadd.f32 %v392_v38, %v390_v39 }
  0xb9   : > { %397 = vst.msk [vmem:[#allocation2 + $0x8] sm:$0xff] %vm395_vm5, %v394_v40 }
  0xba   : > { %v402_v41 = vld [vmem:[#allocation2] sm:$0xff] }
  0xbb   : > { %v649_v42 = vld [vmem:[%s830_s2] ss:$0 sm:$0xff] }
  0xbc   : > { %v408_v44 = vadd.f32 %v649_v42, %v402_v41 }
  0xbe   : > { %vm410_vm6 = vcmp.ge.f32.partialorder %v408_v44, 0.0  ;;  %v412_v46 = vmul.f32 0.1, %v408_v44 }
  0xc0   : > { %v403_v43 = vld [vmem:[#allocation2 + $0x8] sm:$0xff]  ;;  %v414_v48 = vsel %vm410_vm6, %v408_v44, %v412_v46 }
  0xc1   : > { %v409_v45 = vadd.f32 %v649_v42, %v403_v43  ;;  %416 = vst.msk [vmem:[%s788_s20] sm:$0xff] %vm395_vm5, %v414_v48 }
  0xc3   : > { %vm411_vm7 = vcmp.ge.f32.partialorder %v409_v45, 0.0  ;;  %v413_v47 = vmul.f32 0.1, %v409_v45 }
  0xc5   : > { %v415_v49 = vsel %vm411_vm7, %v409_v45, %v413_v47 }
  0xc6   : > { %417 = vst.msk [vmem:[%s788_s20 + $0x8] sm:$0xff] %vm395_vm5, %v415_v49 }
  0xc7 PF: > { %s13_s18 = sadd.s32 1, %s704_s18   ;;  %s834_s21 = sld [smem:[#allocation3_spill]] }
  0xc8   : > { %p10_p12 = scmp.ge.s32.totalorder %s13_s18, 98   ;;  %s835_s23 = sld [smem:[#allocation4_spill]] }
  0xc9   : > { %s836_s12 = smov %s692_s15  ;;  %s837_s13 = smov %s696_s16 }
  0xca   : > { %s838_s14 = smov %s700_s17  ;;  %s839_s15 = smov %s843_s19 }
  0xcb   :  { %12 = sbr.rel (!%p10_p12) target bundleno = 4 (0x4), region = 76 }
  0xcd   : > { %s840_s16 = smov %s834_s21 }
  0xce   : > { %s841_s17 = smov %s835_s23 }

</bundles_post_ra>
